<compile_context>
chip_gen: v7x
topology: tpu7x:2x2x1
jax: 0.10.0
libtpu: 0.0.40
codegen_flags: <defaults>
</compile_context>

<pallas_src>
import numpy as np
import jax
import jax.numpy as jnp
from jax.experimental import pallas as pl
from jax.experimental.pallas import tpu as pltpu


def _round_up(a: int, b: int) -> int:
    return (a + b - 1) // b * b


# -----------------------------------------------------------------------------
# Pallas kernels: the per-batch-tile hot loop (pure broadcast multiply-add).
# -----------------------------------------------------------------------------
def _mask_apply_kernel(x_ref, scale_ref, shift_ref, alpha_ref, out_ref):
    # x_ref:     (TB, Fp)   input features (cast to f32 at load)
    # scale_ref: (1,  Fp)   1/std
    # shift_ref: (1,  Fp)   mean/std
    # alpha_ref: (N,  Fp)   attention weights already scaled by (N+1)^2
    # out_ref:   (N, TB, Fp)
    xn = x_ref[...].astype(jnp.float32) * scale_ref[...] - shift_ref[...]
    out = alpha_ref[...][:, None, :] * xn[None, :, :]
    out_ref[...] = out.astype(out_ref.dtype)


def _mask_apply_noise_kernel(x_ref, scale_ref, shift_ref, alpha_ref,
                             coef_ref, rnd_ref, out_ref):
    # coef_ref: (N, Fp)      (1 - alpha/max_att) * noise   (precomputed)
    # rnd_ref:  (N, TB, Fp)  standard-normal draws
    xn = x_ref[...].astype(jnp.float32) * scale_ref[...] - shift_ref[...]
    out = (alpha_ref[...][:, None, :] * xn[None, :, :]
           + coef_ref[...][:, None, :] * rnd_ref[...].astype(jnp.float32))
    out_ref[...] = out.astype(out_ref.dtype)


# -----------------------------------------------------------------------------
# Batch-independent attention math (Mask_proteins.get_softmax + pair gather),
# hoisted out of the kernel: it only touches (N, number_weights)/(N, F) data.
# -----------------------------------------------------------------------------
def _attention_weights(alphas, bs_per_res, residues_1, residues_2,
                       factor_fake, cutoff, noise):
    alphas = alphas.astype(jnp.float32)
    N, number_weights = alphas.shape
    sm = jax.nn.softmax(alphas, axis=1) * number_weights          # (N, W)
    # sliding-window product per residue (static index table bs_per_res)
    w_res = jnp.prod(sm[:, bs_per_res], axis=-1)                  # (N, n_res)
    # fake subsystem + cutoff + renormalisation over the N+1 subsystems
    # (concat-free: the fake row contributes max(factor_fake - cutoff, 0))
    w_relu = jnp.maximum(w_res - float(cutoff), 0.0)
    denom = (jnp.sum(w_relu, axis=0, keepdims=True)
             + max(float(factor_fake) - float(cutoff), 0.0))      # (1, n_res)
    w_norm = w_relu / denom                                       # (N, n_res)
    # residue-pair gather (static index arrays) and (N+1) scaling folded in
    prod = float(N + 1)
    alpha = (w_norm[:, residues_1] * prod) * (w_norm[:, residues_2] * prod)  # (N, F)
    coef = None
    if noise > 0.0:
        max_att = jnp.max(alpha, axis=1, keepdims=True)           # (N, 1)
        coef = (1.0 - alpha / max_att) * float(noise)             # (N, F)
    return alpha, coef


# -----------------------------------------------------------------------------
# Wrapper: layout, padding, tiling, pallas_call.
# -----------------------------------------------------------------------------
def mask_proteins_forward(x, alphas, mean, std, bs_per_res, residues_1, residues_2,
                          *, factor_fake=3.0, noise=0.0, cutoff=0.5,
                          rnd=None, out_dtype=None, batch_tile=None):
    """Forward pass of Mask_proteins.

    x:      (B, F)                  residue-pair distances
    alphas: (N, number_weights)     the N per-subsystem attention parameters
    mean/std: (1, F)
    rnd:    (N, B, F) standard-normal draws, required iff noise > 0.

    Returns a single stacked (N, B, F) array; out[n] equals the PyTorch
    masked_list[n][:, :, 0].
    """
    B, F = x.shape
    N = alphas.shape[0]
    out_dtype = jnp.dtype(out_dtype) if out_dtype is not None else x.dtype

    # --- hoisted, batch-independent weight math (plain JAX, tiny) -----------
    alpha, coef = _attention_weights(
        alphas, np.asarray(bs_per_res), np.asarray(residues_1),
        np.asarray(residues_2), factor_fake, cutoff, noise)
    scale = 1.0 / std.astype(jnp.float32).reshape(1, F)           # 1/std
    shift = mean.astype(jnp.float32).reshape(1, F) * scale        # mean/std

    if noise > 0.0 and rnd is None:
        raise ValueError("noise > 0 requires `rnd` of shape (N, B, F) "
                         "(standard-normal draws, e.g. jax.random.normal).")

    # --- layout: lane-dense feature axis, batch-tiled grid ------------------
    Fp = _round_up(F, 128)
    x_bytes = jnp.dtype(x.dtype).itemsize
    o_bytes = jnp.dtype(out_dtype).itemsize
    r_bytes = 4 if noise > 0.0 else 0
    # double-buffered bytes per batch row (x tile + out tile [+ rnd tile])
    per_row = 2 * Fp * (x_bytes + N * (o_bytes + r_bytes))
    budget = 24 * 1024 * 1024          # leaves headroom inside v7x's 64 MiB VMEM
    if batch_tile is None:
        tb = max(8, min(512, (budget // max(per_row, 1)) // 8 * 8))
    else:
        tb = max(8, _round_up(int(batch_tile), 8))
    tb = min(tb, _round_up(B, 8))
    Bp = _round_up(B, tb)

    def pad2(a, rows, cols):
        r, c = a.shape
        if r == rows and c == cols:
            return a
        return jnp.pad(a, ((0, rows - r), (0, cols - c)))

    xp = pad2(x, Bp, Fp)
    scale_p = pad2(scale, 1, Fp)          # padded lanes get 0 -> padded out is 0
    shift_p = pad2(shift, 1, Fp)
    alpha_p = pad2(alpha, N, Fp)

    grid = (Bp // tb,)
    x_spec = pl.BlockSpec((tb, Fp), lambda i: (i, 0))
    vec_spec = pl.BlockSpec((1, Fp), lambda i: (0, 0))      # resident across grid
    nf_spec = pl.BlockSpec((N, Fp), lambda i: (0, 0))       # resident across grid
    out_spec = pl.BlockSpec((N, tb, Fp), lambda i: (0, i, 0))
    cparams = pltpu.CompilerParams(
        dimension_semantics=("parallel",),                  # megacore on v7x
        vmem_limit_bytes=40 * 1024 * 1024)

    out_shape = jax.ShapeDtypeStruct((N, Bp, Fp), out_dtype)

    if noise > 0.0:
        coef_p = pad2(coef, N, Fp)
        rnd_p = rnd.astype(jnp.float32)
        if rnd_p.shape != (N, Bp, Fp):
            rnd_p = jnp.pad(rnd_p, ((0, 0), (0, Bp - B), (0, Fp - F)))
        out = pl.pallas_call(
            _mask_apply_noise_kernel,
            out_shape=out_shape,
            grid=grid,
            in_specs=[x_spec, vec_spec, vec_spec, nf_spec, nf_spec,
                      pl.BlockSpec((N, tb, Fp), lambda i: (0, i, 0))],
            out_specs=out_spec,
            compiler_params=cparams,
        )(xp, scale_p, shift_p, alpha_p, coef_p, rnd_p)
    else:
        out = pl.pallas_call(
            _mask_apply_kernel,
            out_shape=out_shape,
            grid=grid,
            in_specs=[x_spec, vec_spec, vec_spec, nf_spec],
            out_specs=out_spec,
            compiler_params=cparams,
        )(xp, scale_p, shift_p, alpha_p)

    if Bp != B or Fp != F:
        out = out[:, :B, :F]
    return out


# -----------------------------------------------------------------------------
# Static geometry from Mask_proteins.__init__.
# -----------------------------------------------------------------------------
def build_mask_proteins_geometry(n_residues, skip_res, patchsize, skip):
    nb_per_res = int(np.ceil(patchsize / skip))
    balance = n_residues % skip // 2
    bs_per_res = np.empty((n_residues, nb_per_res), dtype=np.int64)
    for i in range(n_residues):
        start = (i + balance) // skip
        bs_per_res[i] = np.arange(start, start + nb_per_res)
    number_weights = int(bs_per_res[-1, -1] + 1)
    residues_1, residues_2 = [], []
    for n1 in range(n_residues - skip_res):
        for n2 in range(n1 + skip_res, n_residues):
            residues_1.append(n1)
            residues_2.append(n2)
    return bs_per_res, np.asarray(residues_1), np.asarray(residues_2), number_weights


# -----------------------------------------------------------------------------
# Pure-JAX transcription of the PyTorch forward (structure kept identical to
# the torch code, incl. the explicit concat) -- used only for verification.
# -----------------------------------------------------------------------------
def _torch_style_reference(x, alphas, mean, std, bs_per_res, res1, res2,
                           factor_fake, noise, cutoff, rnd_nbf=None):
    N, W = alphas.shape
    n_res = bs_per_res.shape[0]
    sm = jax.nn.softmax(alphas.astype(jnp.float32), axis=1) * W       # (N, W)
    w_res = jnp.prod(sm[:, bs_per_res], axis=-1)                      # (N, n_res)
    weights_per_N = w_res.T                                           # (n_res, N)
    fake = jnp.full((n_res, 1), factor_fake, jnp.float32)
    wf = jnp.concatenate([weights_per_N, fake], axis=1)
    wf = jnp.maximum(wf - cutoff, 0.0)
    wf = wf / jnp.sum(wf, axis=1, keepdims=True)
    w = wf[:, :N]                                                     # (n_res, N)
    prod = N + 1
    w1 = w[res1] * prod                                               # (F, N)
    w2 = w[res2] * prod
    alpha = (w1 * w2)[None]                                           # (1, F, N)
    xn = (x.astype(jnp.float32) - mean) / std                         # (B, F)
    masked = xn[:, :, None] * alpha                                   # (B, F, N)
    if noise > 0.0:
        max_att = jnp.max(alpha, axis=1, keepdims=True)               # (1, 1, N)
        rnd_bfn = jnp.moveaxis(rnd_nbf, 0, 2) * noise                 # (B, F, N)
        masked = masked + (1.0 - alpha / max_att) * rnd_bfn
    return jnp.moveaxis(masked, 2, 0)                                 # (N, B, F)


if __name__ == "__main__":
    # Small, module-consistent shapes: 16 residues, skip_res=1
    #   -> input_size = 15*16/2 = 120 residue-pair distances.
    n_residues, skip_res, patchsize, skip = 16, 1, 4, 2
    N, B = 3, 4
    factor_fake, cutoff = 3.0, 0.5

    bs_per_res, res1, res2, number_weights = build_mask_proteins_geometry(
        n_residues, skip_res, patchsize, skip)
    input_size = len(res1)   # 120

    key = jax.random.PRNGKey(0)
    kx, ka, km, ks, kr = jax.random.split(key, 5)
    x = jax.random.normal(kx, (B, input_size), jnp.float32)
    # torch init is all-ones (trivial mask); random values exercise the
    # softmax / window-product / cutoff / renormalisation path.
    alphas = 0.3 * jax.random.normal(ka, (N, number_weights), jnp.float32)
    mean = jax.random.normal(km, (1, input_size), jnp.float32)
    std = jax.random.uniform(ks, (1, input_size), jnp.float32, minval=0.5, maxval=1.5)

    # --- noise = 0 path (module default) -------------------------------------
    out = mask_proteins_forward(x, alphas, mean, std, bs_per_res, res1, res2,
                                factor_fake=factor_fake, noise=0.0, cutoff=cutoff)
    out = jax.block_until_ready(out)
    ref = _torch_style_reference(x, alphas, mean, std, bs_per_res, res1, res2,
                                 factor_fake, 0.0, cutoff)
    assert out.shape == (N, B, input_size)
    assert jnp.allclose(out, ref, atol=1e-4, rtol=1e-4), \
        float(jnp.max(jnp.abs(out - ref)))

    # --- noise > 0 path (explicit normal draws so kernel and reference agree)
    noise = 0.25
    rnd = jax.random.normal(kr, (N, B, input_size), jnp.float32)
    out_n = mask_proteins_forward(x, alphas, mean, std, bs_per_res, res1, res2,
                                  factor_fake=factor_fake, noise=noise,
                                  cutoff=cutoff, rnd=rnd)
    out_n = jax.block_until_ready(out_n)
    ref_n = _torch_style_reference(x, alphas, mean, std, bs_per_res, res1, res2,
                                   factor_fake, noise, cutoff, rnd_nbf=rnd)
    assert jnp.allclose(out_n, ref_n, atol=1e-4, rtol=1e-4), \
        float(jnp.max(jnp.abs(out_n - ref_n)))

    print("KERNEL_OK")
</pallas_src>

<mosaic_0001>
module attributes {stable_mosaic.version = 11 : i64} {
  func.func @_mask_apply_kernel(%arg0: i32, %arg1: memref<8x128xf32, #tpu.memory_space<vmem>>, %arg2: memref<1x128xf32, #tpu.memory_space<vmem>>, %arg3: memref<1x128xf32, #tpu.memory_space<vmem>>, %arg4: memref<3x128xf32, #tpu.memory_space<vmem>>, %arg5: memref<3x8x128xf32, #tpu.memory_space<vmem>>) attributes {dimension_semantics = [#tpu.dimension_semantics<parallel>], iteration_bounds = array<i64: 1>, scalar_prefetch = 0 : i64, scratch_operands = 0 : i64, tpu.core_type = #tpu.core_type<tc>, window_params = [{transform_indices = @transform_0, window_bounds = array<i64: 8, 128>}, {pipeline_mode = #tpu.pipeline_mode<synchronous>, transform_indices = @transform_1, window_bounds = array<i64: 1, 128>}, {pipeline_mode = #tpu.pipeline_mode<synchronous>, transform_indices = @transform_2, window_bounds = array<i64: 1, 128>}, {pipeline_mode = #tpu.pipeline_mode<synchronous>, transform_indices = @transform_3, window_bounds = array<i64: 3, 128>}, {transform_indices = @transform_4, window_bounds = array<i64: 3, 8, 128>}]} {
    %c0 = arith.constant 0 : index
    %c0_0 = arith.constant 0 : index
    %0 = vector.load %arg1[%c0, %c0_0] : memref<8x128xf32, #tpu.memory_space<vmem>>, vector<8x128xf32>
    %c0_1 = arith.constant 0 : index
    %c0_2 = arith.constant 0 : index
    %1 = vector.load %arg2[%c0_1, %c0_2] : memref<1x128xf32, #tpu.memory_space<vmem>>, vector<1x128xf32>
    %2 = vector.broadcast %1 : vector<1x128xf32> to vector<8x128xf32>
    %3 = arith.mulf %0, %2 : vector<8x128xf32>
    %c0_3 = arith.constant 0 : index
    %c0_4 = arith.constant 0 : index
    %4 = vector.load %arg3[%c0_3, %c0_4] : memref<1x128xf32, #tpu.memory_space<vmem>>, vector<1x128xf32>
    %5 = vector.broadcast %4 : vector<1x128xf32> to vector<8x128xf32>
    %6 = arith.subf %3, %5 : vector<8x128xf32>
    %c0_5 = arith.constant 0 : index
    %c0_6 = arith.constant 0 : index
    %7 = vector.load %arg4[%c0_5, %c0_6] : memref<3x128xf32, #tpu.memory_space<vmem>>, vector<3x128xf32>
    %8 = vector.shape_cast %7 : vector<3x128xf32> to vector<3x1x128xf32>
    %9 = vector.shape_cast %6 : vector<8x128xf32> to vector<1x8x128xf32>
    %10 = vector.broadcast %8 : vector<3x1x128xf32> to vector<3x8x128xf32>
    %11 = vector.broadcast %9 : vector<1x8x128xf32> to vector<3x8x128xf32>
    %12 = arith.mulf %10, %11 : vector<3x8x128xf32>
    %c0_7 = arith.constant 0 : index
    %c0_8 = arith.constant 0 : index
    %c0_9 = arith.constant 0 : index
    %13 = vector.load %arg5[%c0_7, %c0_8, %c0_9] : memref<3x8x128xf32, #tpu.memory_space<vmem>>, vector<3x8x128xf32>
    tpu.vector_store %arg5[%c0_7, %c0_8, %c0_9], %12 {strides = array<i32>} : memref<3x8x128xf32, #tpu.memory_space<vmem>>, vector<3x8x128xf32>,
    return
  }
  func.func @transform_0(%arg0: i32) -> (i32, i32) {
    %c0_i32 = arith.constant 0 : i32
    %c0_i32_0 = arith.constant 0 : i32
    return %arg0, %c0_i32 : i32, i32
  }
  func.func @transform_1(%arg0: i32) -> (i32, i32) {
    %c0_i32 = arith.constant 0 : i32
    %c0_i32_0 = arith.constant 0 : i32
    %c0_i32_1 = arith.constant 0 : i32
    return %c0_i32, %c0_i32_0 : i32, i32
  }
  func.func @transform_2(%arg0: i32) -> (i32, i32) {
    %c0_i32 = arith.constant 0 : i32
    %c0_i32_0 = arith.constant 0 : i32
    %c0_i32_1 = arith.constant 0 : i32
    return %c0_i32, %c0_i32_0 : i32, i32
  }
  func.func @transform_3(%arg0: i32) -> (i32, i32) {
    %c0_i32 = arith.constant 0 : i32
    %c0_i32_0 = arith.constant 0 : i32
    %c0_i32_1 = arith.constant 0 : i32
    return %c0_i32, %c0_i32_0 : i32, i32
  }
  func.func @transform_4(%arg0: i32) -> (i32, i32, i32) {
    %c0_i32 = arith.constant 0 : i32
    %c0_i32_0 = arith.constant 0 : i32
    %c0_i32_1 = arith.constant 0 : i32
    return %c0_i32, %arg0, %c0_i32_0 : i32, i32, i32
  }
}

</mosaic_0001>

<bundles_post_ra>
// kernel: tpu_custom_call.1
= control target key start
LH: loop header
LB: loop body
LE: loop exit
PB: predicated region body
PF: predicated region fallthrough
CT: control target
= control target key end

     0   :  { %9 = vsyncpa [#allocation3], 0  ;;  %s229_s0 = inlined_call_operand.hbm [shape: f32[8,128], index: 0, kind: input, shape index: {}]   ;;  %s230_s1 = inlined_call_operand.vmem [shape: f32[1,128], index: 1, kind: input, shape index: {}]   ;;  %s231_s2 = inlined_call_operand.vmem [shape: f32[1,128], index: 2, kind: input, shape index: {}]   ;;  %s232_s3 = inlined_call_operand.vmem [shape: f32[3,128], index: 3, kind: input, shape index: {}]   ;;  %s233_s4 = inlined_call_operand.hbm [shape: f32[3,8,128], index: 4, kind: output, shape index: {}]  }
   0x1   :  { %10 = vsyncpa [#allocation4], 0  ;;  %s166_s15 = smov [#allocation2]   ;;  %s118_s19 = scalar_lea.hbm %s229_s0, 128 }
   0x2   :  { %s17_s16 = sshll.u32 %s166_s15, 4  ;;  %p119_p0 = scmp.ne.s32.totalorder %s229_s0, %s118_s19  ;;  %s18_s16 = int_to_ptr.vmem [resolvable:$true] %s17_s16 }
   0x3   :  { %p122_p1 = scmp.lt.u32.totalorder %s118_s19, %s229_s0 }
   0x5   :  { %p124_p2 = pnand %p122_p1, %p119_p0 }
   0x7   :  { %127 = shalt.err (!%p124_p2)
}
   0x8   :  { %s128_s24 = scalar_lea.vmem %s18_s16, 128  ;;  %p133_p4 = scmp.lt.s32.totalorder %s18_s16, %s18_s16 }
   0x9   :  { %p129_p3 = scmp.ne.s32.totalorder %s18_s16, %s128_s24  ;;  %p134_p5 = scmp.lt.s32.totalorder %s128_s24, %s128_s24 }
   0xb   :  { %p135_p6 = por %p134_p5, %p133_p4 }
   0xd   :  { %p136_p7 = pnand %p135_p6, %p129_p3 }
   0xf   :  { %139 = shalt.err (!%p136_p7)
}
  0x10   :  { %20 = dma.hbm_to_vmem [thread:$0]  %s229_s0, 128, %s18_s16, [#allocation3]  }
  0x11   :  { %162 = dma.done.wait [#allocation3], 128  }
  0x12   :  { %163 = vsyncadd [#allocation3], 4294967168  ;;  %v60_v0 = vlaneseq  ;;  %v167_v1 = vmov 1966171168   ;;  %v30_v6 = vld [vmem:[#allocation2] sm:$0xff]  ;;  %s168_s6 = smov [#allocation5]  }
  0x13   :  { %v58_v2 = vunpack.c.l.s4 %v167_v1  ;;  %v110_v7 = vld [vmem:[%s230_s1] ss:$0 sm:$0xff]  ;;  %s98_s7 = sshll.u32 %s168_s6, 4  ;;  %s99_s7 = int_to_ptr.vmem [resolvable:$true] %s98_s7 }
  0x14   :  { %v61_v3 = vshrl.u32 %v60_v0, 7  ;;  %v111_v8 = vld [vmem:[%s231_s2] ss:$0 sm:$0xff]  ;;  %v38_v10 = vmul.f32 %v110_v7, %v30_v6  ;;  %s140_s1 = scalar_lea.vmem %s99_s7, 384  ;;  %p145_p9 = scmp.lt.s32.totalorder %s99_s7, %s99_s7 }
  0x15   :  { %v59_v4 = vunpack.c.0.s8 %v58_v2  ;;  %v112_v11 = vld.sshfl [vmem:[%s232_s3] sm:$0x13 pattern:$0x75316420]  ;;  %p141_p8 = scmp.ne.s32.totalorder %s99_s7, %s140_s1  ;;  %p146_p10 = scmp.lt.s32.totalorder %s140_s1, %s140_s1 }
  0x16   :  { %v74_v9 = vsub.s32 0, %v61_v3  ;;  %v56_v13 = vcombine.high %v112_v11, %v112_v11  ;;  %v46_v14 = vsub.f32 %v38_v10, %v111_v8 }
  0x17   :  { %v62_v5 = vsub.s32 %v59_v4, %v61_v3  ;;  %p147_p11 = por %p146_p10, %p145_p9 }
  0x19   :  { %v63_v12 = vrot.slane %v112_v11, %v62_v5  ;;  %v70_v16 = vrot.slane %v56_v13, %v62_v5  ;;  %p148_p12 = pnand %p147_p11, %p141_p8 }
  0x1b   :  { %v75_v15 = vrot.slane %v63_v12, %v74_v9  ;;  %v71_v17 = vcombine.high %v63_v12, %v63_v12  ;;  %v79_v19 = vrot.slane %v70_v16, %v74_v9 }
  0x1d   :  { %v87_v18 = vmul.f32 %v75_v15, %v46_v14  ;;  %v83_v20 = vrot.slane %v71_v17, %v74_v9  ;;  %v88_v21 = vmul.f32 %v79_v19, %v46_v14 }
  0x1f   :  { %90 = vst [vmem:[#allocation5] sm:$0xff] %v87_v18  ;;  %v89_v22 = vmul.f32 %v83_v20, %v46_v14  ;;  %91 = vst [vmem:[#allocation5 + $0x8] sm:$0xff] %v88_v21 }
  0x21   :  { %92 = vst [vmem:[#allocation5 + $0x10] sm:$0xff] %v89_v22 }
  0x22   :  { %151 = shalt.err (!%p148_p12)
}
  0x23   :  { %s152_s8 = scalar_lea.hbm %s233_s4, 384 }
  0x24   :  { %p153_p13 = scmp.ne.s32.totalorder %s233_s4, %s152_s8  ;;  %p156_p0 = scmp.lt.u32.totalorder %s152_s8, %s233_s4 }
  0x26   :  { %p158_p1 = pnand %p156_p0, %p153_p13 }
  0x28   :  { %161 = shalt.err (!%p158_p1)
}
  0x29   :  { %s169_s13 = smov 128   ;;  %s170_s14 = smov 8  }
  0x2a   :  { %104 = dma.vmem_to_hbm [thread:$0]  %s99_s7, 384, %s233_s4, [#allocation4], %s169_s13, %s169_s13, %s170_s14  }
  0x2b   :  { %164 = dma.done.wait [#allocation4], 384  }
  0x2c   :  { %165 = vsyncadd [#allocation4], 4294966912 }
  0x2d   :  { %108 = vsyncpa [#allocation3], 1 }
  0x2e   :  { %109 = vsyncpa [#allocation4], 1 }

</bundles_post_ra>
